<compile_context>
chip_gen: v6e
topology: v6e:2x2x1
jax: 0.10.0
libtpu: 0.0.40
codegen_flags: <defaults>
</compile_context>

<pallas_src>
import functools

import jax
import jax.numpy as jnp
from jax.experimental import pallas as pl
from jax.experimental.pallas import tpu as pltpu


def _round_up(x, m):
    return ((x + m - 1) // m) * m


# ----------------------------- Pallas kernel ------------------------------ #

def _ensemble_kernel(x_sel_ref,            # scalar prefetch (unused in body)
                     x_ref,                # (1, C,  Mp)   selected input (lane-dense M)
                     w1_ref,               # (1, HID, C)   backbone weight^T
                     b1_ref,               # (1, HID, 1)   backbone bias
                     wh_ref,               # (1, HP, HID)  fused box+class head weight^T
                     bh_ref,               # (1, HP, 1)    fused head bias
                     mask_ref,             # (1, HP, 1)    1.0 on this model's class rows
                     out_ref):             # (1, HP, Mp)
    # backbone: relu(w1^T @ x + b1) -- M stays on the lane axis throughout.
    h = jnp.dot(w1_ref[0], x_ref[0], preferred_element_type=jnp.float32)
    h = jnp.maximum(h + b1_ref[0], 0.0)                         # (HID, Mp)
    h = h.astype(wh_ref.dtype)
    # fused box + class head: single MXU pass, one dense store.
    z = jnp.dot(wh_ref[0], h, preferred_element_type=jnp.float32) + bh_ref[0]
    # sigmoid only on this model's class rows; box rows stay linear; padding /
    # other-model rows have zero weights+bias -> exactly 0 (merged layout).
    out_ref[0] = jnp.where(mask_ref[0] > 0.5, jax.nn.sigmoid(z), z)


# ------------------------------ param packing ------------------------------ #

def _pack_params(params_1, params_2, params_3, hidden):
    """Stack the three sub-models into the fused, transposed kernel layout."""
    all_params = (params_1, params_2, params_3)
    ncls = tuple(p[4].shape[1] for p in all_params)
    c1, c2, c3 = ncls
    # merged conf layout for models 1/2 is [cls_1 | cls_2]; model 3 standalone.
    head_used = max(4 + c1 + c2, 4 + c3)
    head_pad = _round_up(head_used, 8)
    cls_off = (4, 4 + c1, 4)               # row offset of each model's classes

    w1T = jnp.stack([p[0].T for p in all_params])        # (3, HID, C)
    b1T = jnp.stack([p[1].T for p in all_params])        # (3, HID, 1)

    whT_list, bh_list, mask_list = [], [], []
    for m, p in enumerate(all_params):
        _, _, wb, bb, wc, bc = p
        nc = wc.shape[1]
        off = cls_off[m]
        wh = jnp.zeros((head_pad, hidden), jnp.float32)
        wh = wh.at[0:4, :].set(wb.T)
        wh = wh.at[off:off + nc, :].set(wc.T)
        bh = jnp.zeros((head_pad, 1), jnp.float32)
        bh = bh.at[0:4, 0].set(bb[0])
        bh = bh.at[off:off + nc, 0].set(bc[0])
        msk = jnp.zeros((head_pad, 1), jnp.float32)
        msk = msk.at[off:off + nc, 0].set(1.0)
        whT_list.append(wh)
        bh_list.append(bh)
        mask_list.append(msk)

    arrays = dict(
        x_sel=jnp.array([0, 0, 1], jnp.int32),  # models 1,2 read x1; model 3 reads x2
        w1T=w1T, b1T=b1T,
        whT=jnp.stack(whT_list), bh=jnp.stack(bh_list), mask=jnp.stack(mask_list),
    )
    dims = (hidden, head_pad, c1, c2, c3)
    return arrays, dims


# ------------------------------- forward ----------------------------------- #

def _to_lane_major(x_nchw, m_pad):
    """NCHW -> (C, B*H*W) with the flattened pixel axis zero-padded to m_pad."""
    B, C, H, W = x_nchw.shape
    xt = jnp.transpose(x_nchw, (1, 0, 2, 3)).reshape(C, B * H * W)
    pad = m_pad - B * H * W
    if pad:
        xt = jnp.pad(xt, ((0, 0), (0, pad)))
    return xt


@functools.partial(jax.jit, static_argnames=("dims", "compute_dtype"))
def _ensemble_forward(x1, x2, arrays, dims, compute_dtype=jnp.float32):
    hidden, head_pad, c1, c2, c3 = dims
    B, C, H, W = x1.shape
    n = H * W
    m_rows = B * n
    m_pad = _round_up(m_rows, 128)          # lane-dense, no divisibility assert

    x_stack = jnp.stack(
        [_to_lane_major(x1, m_pad), _to_lane_major(x2, m_pad)]
    ).astype(compute_dtype)                  # (2, C, Mp)
    w1T = arrays["w1T"].astype(compute_dtype)
    whT = arrays["whT"].astype(compute_dtype)

    grid_spec = pltpu.PrefetchScalarGridSpec(
        num_scalar_prefetch=1,
        grid=(3,),
        in_specs=[
            pl.BlockSpec((1, C, m_pad), lambda i, xs: (xs[i], 0, 0)),        # x (shared)
            pl.BlockSpec((1, hidden, C), lambda i, xs: (i, 0, 0)),           # w1^T
            pl.BlockSpec((1, hidden, 1), lambda i, xs: (i, 0, 0)),           # b1
            pl.BlockSpec((1, head_pad, hidden), lambda i, xs: (i, 0, 0)),    # wh^T
            pl.BlockSpec((1, head_pad, 1), lambda i, xs: (i, 0, 0)),         # bh
            pl.BlockSpec((1, head_pad, 1), lambda i, xs: (i, 0, 0)),         # sig mask
        ],
        out_specs=pl.BlockSpec((1, head_pad, m_pad), lambda i, xs: (i, 0, 0)),
    )

    out_all = pl.pallas_call(
        _ensemble_kernel,
        out_shape=jax.ShapeDtypeStruct((3, head_pad, m_pad), jnp.float32),
        grid_spec=grid_spec,
        compiler_params=pltpu.CompilerParams(
            dimension_semantics=("parallel",)),   # model axis -> both TCs on v7x
    )(arrays["x_sel"], x_stack, w1T, arrays["b1T"], whT,
      arrays["bh"], arrays["mask"])

    def rows(mdl, lo, hi):
        # (hi-lo, M) -> (B, N, hi-lo)
        return out_all[mdl, lo:hi, :m_rows].T.reshape(B, n, hi - lo)

    boxes_1 = rows(0, 0, 4)
    boxes_2 = rows(1, 0, 4)
    boxes_3 = rows(2, 0, 4)
    # conf rows of models 1/2 are already written at their merged column
    # offsets (the other model's columns are exact zeros from the kernel),
    # so merge_outputs' zero-padding + class-dim concat is already done.
    confs_1m = rows(0, 4, 4 + c1 + c2)
    confs_2m = rows(1, 4, 4 + c1 + c2)
    confs_3 = rows(2, 4, 4 + c3)

    output_t = [jnp.concatenate([boxes_1, boxes_2], axis=1),     # (B, 2N, 4)
                jnp.concatenate([confs_1m, confs_2m], axis=1)]   # (B, 2N, c1+c2)
    output_3 = [boxes_3, confs_3]
    return output_t, output_3


def ensemble_model_ocr_forward(x1, x2, params_1, params_2, params_3,
                               compute_dtype=jnp.float32):
    """Mirrors Ensemble_model_ocr.forward (debug print()s omitted).

    compute_dtype=jnp.bfloat16 is available for v6e/v7x (MXU bf16-native);
    f32 is kept as the default for parity with the f32 PyTorch reference.
    """
    hidden = params_1[0].shape[1]
    arrays, dims = _pack_params(params_1, params_2, params_3, hidden)
    return _ensemble_forward(x1, x2, arrays, dims, compute_dtype=compute_dtype)


# ------------------------ pure-JAX reference (check) ------------------------ #

def _detector_ref(x_nchw, params):
    w1, b1, wb, bb, wc, bc = params
    B, C, H, W = x_nchw.shape
    x = jnp.transpose(x_nchw, (0, 2, 3, 1)).reshape(B * H * W, C)
    h = jnp.maximum(x @ w1 + b1, 0.0)
    boxes = (h @ wb + bb).reshape(B, H * W, 4)
    confs = jax.nn.sigmoid(h @ wc + bc).reshape(B, H * W, -1)
    return [boxes, confs]


def _merge_outputs_ref(o1, o2):
    z1 = jnp.zeros_like(o2[1])
    z2 = jnp.zeros_like(o1[1])
    o1c = jnp.concatenate([o1[1], z1], axis=2)
    o2c = jnp.concatenate([z2, o2[1]], axis=2)
    boxes = jnp.concatenate([o1[0], o2[0]], axis=1)
    confs = jnp.concatenate([o1c, o2c], axis=1)
    return [boxes, confs]


# --------------------------- parameter creation ---------------------------- #

def init_detector_params(key, c_in, hidden, ncls):
    k1, k2, k3, k4, k5, k6 = jax.random.split(key, 6)
    w1 = jax.random.normal(k1, (c_in, hidden), jnp.float32) * 0.1
    b1 = jax.random.normal(k2, (1, hidden), jnp.float32) * 0.01
    wb = jax.random.normal(k3, (hidden, 4), jnp.float32) * 0.1
    bb = jax.random.normal(k4, (1, 4), jnp.float32) * 0.01
    wc = jax.random.normal(k5, (hidden, ncls), jnp.float32) * 0.1
    bc = jax.random.normal(k6, (1, ncls), jnp.float32) * 0.01
    return (w1, b1, wb, bb, wc, bc)


# ---------------------------------- main ----------------------------------- #

if __name__ == "__main__":
    key = jax.random.PRNGKey(0)
    kx1, kx2, km1, km2, km3 = jax.random.split(key, 5)

    B, C, H, W = 2, 4, 16, 16
    HIDDEN = 32
    NCLS_1, NCLS_2, NCLS_3 = 5, 3, 6

    x1 = jax.random.normal(kx1, (B, C, H, W), jnp.float32)
    x2 = jax.random.normal(kx2, (B, C, H, W), jnp.float32)

    params_1 = init_detector_params(km1, C, HIDDEN, NCLS_1)
    params_2 = init_detector_params(km2, C, HIDDEN, NCLS_2)
    params_3 = init_detector_params(km3, C, HIDDEN, NCLS_3)

    (output_t, output_3) = ensemble_model_ocr_forward(
        x1, x2, params_1, params_2, params_3)

    jax.block_until_ready(output_t[0])
    jax.block_until_ready(output_t[1])
    jax.block_until_ready(output_3[0])
    jax.block_until_ready(output_3[1])

    # shape checks (N = H*W per model; dims follow merge_outputs)
    N = H * W
    assert output_t[0].shape == (B, 2 * N, 4)
    assert output_t[1].shape == (B, 2 * N, NCLS_1 + NCLS_2)
    assert output_3[0].shape == (B, N, 4)
    assert output_3[1].shape == (B, N, NCLS_3)

    # numerical check vs. a pure-JAX reference of the same synthetic model
    o1_ref = _detector_ref(x1, params_1)
    o2_ref = _detector_ref(x1, params_2)
    o3_ref = _detector_ref(x2, params_3)
    ot_ref = _merge_outputs_ref(o1_ref, o2_ref)
    assert jnp.allclose(output_t[0], ot_ref[0], atol=5e-3, rtol=5e-3)
    assert jnp.allclose(output_t[1], ot_ref[1], atol=5e-3, rtol=5e-3)
    assert jnp.allclose(output_3[0], o3_ref[0], atol=5e-3, rtol=5e-3)
    assert jnp.allclose(output_3[1], o3_ref[1], atol=5e-3, rtol=5e-3)

    print("KERNEL_OK")
</pallas_src>

<mosaic_0001>
module attributes {stable_mosaic.version = 11 : i64} {
  func.func @_ensemble_kernel(%arg0: i32, %arg1: memref<3xi32, #tpu.memory_space<smem>>, %arg2: memref<1x4x512xf32, #tpu.memory_space<vmem>>, %arg3: memref<1x32x4xf32, #tpu.memory_space<vmem>>, %arg4: memref<1x32x1xf32, #tpu.memory_space<vmem>>, %arg5: memref<1x16x32xf32, #tpu.memory_space<vmem>>, %arg6: memref<1x16x1xf32, #tpu.memory_space<vmem>>, %arg7: memref<1x16x1xf32, #tpu.memory_space<vmem>>, %arg8: memref<1x16x512xf32, #tpu.memory_space<vmem>>) attributes {dimension_semantics = [#tpu.dimension_semantics<parallel>], iteration_bounds = array<i64: 3>, scalar_prefetch = 1 : i64, scratch_operands = 0 : i64, tpu.core_type = #tpu.core_type<tc>, window_params = [{transform_indices = @transform_0, window_bounds = array<i64: 1, 4, 512>}, {transform_indices = @transform_1, window_bounds = array<i64: 1, 32, 4>}, {transform_indices = @transform_2, window_bounds = array<i64: 1, 32, 1>}, {transform_indices = @transform_3, window_bounds = array<i64: 1, 16, 32>}, {transform_indices = @transform_4, window_bounds = array<i64: 1, 16, 1>}, {transform_indices = @transform_5, window_bounds = array<i64: 1, 16, 1>}, {transform_indices = @transform_6, window_bounds = array<i64: 1, 16, 512>}]} {
    %c0 = arith.constant 0 : index
    %c0_0 = arith.constant 0 : index
    %c0_1 = arith.constant 0 : index
    %0 = vector.load %arg3[%c0, %c0_0, %c0_1] : memref<1x32x4xf32, #tpu.memory_space<vmem>>, vector<1x32x4xf32>
    %1 = vector.shape_cast %0 : vector<1x32x4xf32> to vector<32x4xf32>
    %c0_2 = arith.constant 0 : index
    %c0_3 = arith.constant 0 : index
    %c0_4 = arith.constant 0 : index
    %2 = vector.load %arg2[%c0_2, %c0_3, %c0_4] : memref<1x4x512xf32, #tpu.memory_space<vmem>>, vector<1x4x512xf32>
    %3 = vector.shape_cast %2 : vector<1x4x512xf32> to vector<4x512xf32>
    %cst = arith.constant dense<0.000000e+00> : vector<32x512xf32>
    %4 = tpu.matmul %1, %3, %cst {dimension_numbers = #tpu.dot_dimension_numbers<[1], [0], [0], [1], [0, 0, 1, 1], [], []>} : vector<32x4xf32>, vector<4x512xf32>, vector<32x512xf32> -> vector<32x512xf32>
    %c0_5 = arith.constant 0 : index
    %c0_6 = arith.constant 0 : index
    %c0_7 = arith.constant 0 : index
    %5 = vector.load %arg4[%c0_5, %c0_6, %c0_7] : memref<1x32x1xf32, #tpu.memory_space<vmem>>, vector<1x32x1xf32>
    %6 = vector.shape_cast %5 : vector<1x32x1xf32> to vector<32x1xf32>
    %7 = vector.broadcast %6 : vector<32x1xf32> to vector<32x512xf32>
    %8 = arith.addf %4, %7 : vector<32x512xf32>
    %cst_8 = arith.constant 0.000000e+00 : f32
    %9 = vector.broadcast %cst_8 : f32 to vector<32x512xf32>
    %10 = arith.maximumf %8, %9 : vector<32x512xf32>
    %c0_9 = arith.constant 0 : index
    %c0_10 = arith.constant 0 : index
    %c0_11 = arith.constant 0 : index
    %11 = vector.load %arg5[%c0_9, %c0_10, %c0_11] : memref<1x16x32xf32, #tpu.memory_space<vmem>>, vector<1x16x32xf32>
    %12 = vector.shape_cast %11 : vector<1x16x32xf32> to vector<16x32xf32>
    %cst_12 = arith.constant dense<0.000000e+00> : vector<16x512xf32>
    %13 = tpu.matmul %12, %10, %cst_12 {dimension_numbers = #tpu.dot_dimension_numbers<[1], [0], [0], [1], [0, 0, 1, 1], [], []>} : vector<16x32xf32>, vector<32x512xf32>, vector<16x512xf32> -> vector<16x512xf32>
    %c0_13 = arith.constant 0 : index
    %c0_14 = arith.constant 0 : index
    %c0_15 = arith.constant 0 : index
    %14 = vector.load %arg6[%c0_13, %c0_14, %c0_15] : memref<1x16x1xf32, #tpu.memory_space<vmem>>, vector<1x16x1xf32>
    %15 = vector.shape_cast %14 : vector<1x16x1xf32> to vector<16x1xf32>
    %16 = vector.broadcast %15 : vector<16x1xf32> to vector<16x512xf32>
    %17 = arith.addf %13, %16 : vector<16x512xf32>
    %c0_16 = arith.constant 0 : index
    %c0_17 = arith.constant 0 : index
    %c0_18 = arith.constant 0 : index
    %18 = vector.load %arg7[%c0_16, %c0_17, %c0_18] : memref<1x16x1xf32, #tpu.memory_space<vmem>>, vector<1x16x1xf32>
    %19 = vector.shape_cast %18 : vector<1x16x1xf32> to vector<16x1xf32>
    %cst_19 = arith.constant 5.000000e-01 : f32
    %20 = vector.broadcast %cst_19 : f32 to vector<16x1xf32>
    %21 = arith.cmpf ogt, %19, %20 : vector<16x1xf32>
    %22 = arith.negf %17 : vector<16x512xf32>
    %23 = math.exp %22 : vector<16x512xf32>
    %cst_20 = arith.constant 1.000000e+00 : f32
    %24 = vector.broadcast %cst_20 : f32 to vector<16x512xf32>
    %25 = arith.addf %24, %23 : vector<16x512xf32>
    %26 = arith.divf %24, %25 : vector<16x512xf32>
    %27 = vector.shape_cast %21 : vector<16x1xi1> to vector<16x1xi1>
    %28 = vector.broadcast %27 : vector<16x1xi1> to vector<16x512xi1>
    %29 = arith.select %28, %26, %17 : vector<16x512xi1>, vector<16x512xf32>
    %c0_21 = arith.constant 0 : index
    %c0_22 = arith.constant 0 : index
    %c0_23 = arith.constant 0 : index
    %30 = vector.load %arg8[%c0_21, %c0_22, %c0_23] : memref<1x16x512xf32, #tpu.memory_space<vmem>>, vector<1x16x512xf32>
    %31 = vector.shape_cast %30 : vector<1x16x512xf32> to vector<16x512xf32>
    %32 = vector.shape_cast %29 : vector<16x512xf32> to vector<1x16x512xf32>
    tpu.vector_store %arg8[%c0_21, %c0_22, %c0_23], %32 {strides = array<i32>} : memref<1x16x512xf32, #tpu.memory_space<vmem>>, vector<1x16x512xf32>,
    return
  }
  func.func @transform_0(%arg0: i32, %arg1: memref<3xi32, #tpu.memory_space<smem>>) -> (i32, i32, i32) {
    %0 = arith.index_cast %arg0 : i32 to index
    %1 = memref.load %arg1[%0] : memref<3xi32, #tpu.memory_space<smem>>
    %c0_i32 = arith.constant 0 : i32
    %c0_i32_0 = arith.constant 0 : i32
    %c0_i32_1 = arith.constant 0 : i32
    return %1, %c0_i32, %c0_i32_0 : i32, i32, i32
  }
  func.func @transform_1(%arg0: i32, %arg1: memref<3xi32, #tpu.memory_space<smem>>) -> (i32, i32, i32) {
    %c0_i32 = arith.constant 0 : i32
    %c0_i32_0 = arith.constant 0 : i32
    %c0_i32_1 = arith.constant 0 : i32
    return %arg0, %c0_i32, %c0_i32_0 : i32, i32, i32
  }
  func.func @transform_2(%arg0: i32, %arg1: memref<3xi32, #tpu.memory_space<smem>>) -> (i32, i32, i32) {
    %c0_i32 = arith.constant 0 : i32
    %c0_i32_0 = arith.constant 0 : i32
    %c0_i32_1 = arith.constant 0 : i32
    return %arg0, %c0_i32, %c0_i32_0 : i32, i32, i32
  }
  func.func @transform_3(%arg0: i32, %arg1: memref<3xi32, #tpu.memory_space<smem>>) -> (i32, i32, i32) {
    %c0_i32 = arith.constant 0 : i32
    %c0_i32_0 = arith.constant 0 : i32
    %c0_i32_1 = arith.constant 0 : i32
    return %arg0, %c0_i32, %c0_i32_0 : i32, i32, i32
  }
  func.func @transform_4(%arg0: i32, %arg1: memref<3xi32, #tpu.memory_space<smem>>) -> (i32, i32, i32) {
    %c0_i32 = arith.constant 0 : i32
    %c0_i32_0 = arith.constant 0 : i32
    %c0_i32_1 = arith.constant 0 : i32
    return %arg0, %c0_i32, %c0_i32_0 : i32, i32, i32
  }
  func.func @transform_5(%arg0: i32, %arg1: memref<3xi32, #tpu.memory_space<smem>>) -> (i32, i32, i32) {
    %c0_i32 = arith.constant 0 : i32
    %c0_i32_0 = arith.constant 0 : i32
    %c0_i32_1 = arith.constant 0 : i32
    return %arg0, %c0_i32, %c0_i32_0 : i32, i32, i32
  }
  func.func @transform_6(%arg0: i32, %arg1: memref<3xi32, #tpu.memory_space<smem>>) -> (i32, i32, i32) {
    %c0_i32 = arith.constant 0 : i32
    %c0_i32_0 = arith.constant 0 : i32
    %c0_i32_1 = arith.constant 0 : i32
    return %arg0, %c0_i32, %c0_i32_0 : i32, i32, i32
  }
}

</mosaic_0001>

<bundles_post_ra>
// kernel: _ensemble_forward.1
= control target key start
LH: loop header
LB: loop body
LE: loop exit
PB: predicated region body
PF: predicated region fallthrough
CT: control target
= control target key end

     0   :  { %s1235_s0 = inlined_call_operand.vmem [shape: s32[3], index: 0, kind: input, shape index: {}]   ;;  %s1236_s1 = inlined_call_operand.vmem [shape: f32[2,4,512], index: 1, kind: input, shape index: {}]   ;;  %s1237_s2 = inlined_call_operand.vmem [shape: f32[3,32,4], index: 2, kind: input, shape index: {}]   ;;  %s1238_s3 = inlined_call_operand.vmem [shape: f32[3,32,1], index: 3, kind: input, shape index: {}]   ;;  %s1239_s4 = inlined_call_operand.vmem [shape: f32[3,16,32], index: 4, kind: input, shape index: {}]   ;;  %s1240_s5 = inlined_call_operand.vmem [shape: f32[3,16,1], index: 5, kind: input, shape index: {}]   ;;  %s1241_s6 = inlined_call_operand.vmem [shape: f32[3,16,1], index: 6, kind: input, shape index: {}]   ;;  %s1242_s7 = inlined_call_operand.vmem [shape: f32[3,16,512], index: 7, kind: output, shape index: {}]  }
   0x1   :  { %s12_s26 = sshll.u32 %s1235_s0, 4  ;;  %s13_s26 = int_to_ptr.vmem [resolvable:$true] %s12_s26 }
   0x2   :  { %s1083_s27 = scalar_lea.vmem %s13_s26, 16  ;;  %p1088_p1 = scmp.lt.s32.totalorder %s13_s26, %s13_s26 }
   0x3   :  { %p1084_p0 = scmp.ne.s32.totalorder %s13_s26, %s1083_s27  ;;  %p1089_p2 = scmp.lt.s32.totalorder %s1083_s27, %s1083_s27 }
   0x5   :  { %p1090_p3 = por %p1089_p2, %p1088_p1 }
   0x7   :  { %p1091_p4 = pnand %p1090_p3, %p1084_p0 }
   0x9   :  { %1094 = shalt.err (!%p1091_p4)  }
   0xa   :  { %s1105_s28 = smov [#allocation3]  }
   0xb   :  { %15 = dma.vmem_to_smem %s13_s26, 16, %s1105_s28, [#allocation2] }
   0xc   :  { %1099 = dma.done.wait [#allocation2], 16 }
   0xd   :  { %1100 = vsyncadd [#allocation2], 4294967280 }
   0xe   :  { %17 = sfence }
   0xf   :  { %s1151_s29 = smov 0  }
  0x10 LB: > { %s984_s0 = sadd.s32 4294967295, %s1103_s29   ;;  %p988_p5 = scmp.ge.s32.totalorder %s1103_s29, 1  ;;  %s1103_s29 = sphi %s1151_s29, %s23_s29  }
  0x11   : > { %p273_p6 = scmp.lt.s32.totalorder %s1103_s29, 4 }
  0x13   : > { %p274_p7 = pnand %p988_p5, %p273_p6 }
  0x14   : > { %s329_s30 = sld [smem:[#allocation3 + %s984_s0]] (!%p274_p7)  ;;  %p336_p8 = scmp.lt.s32.totalorder (!%p274_p7), %s984_s0, 2 }
  0x15   : > { %277 = sbr.rel (%p274_p7) target bundleno = 492 (0x1ec), region = 44 }
  0x1a   : > { %v1106_v0 = vmov 0.0   ;;  %s1244_s0 = smov (!%p336_p8, %s984_s0), 2  ;;  %v1107_v1 = vmov 0   ;;  %p330_p9 = scmp.lt.s32.totalorder %s329_s30, 1  ;;  %vm413_vm0 = vcmask 1043456   ;;  %vm400_vm1 = vcmask 31744  }
  0x1b   : > { %486 = vmatprep.mubr.f32.mxu0 %v1106_v0  ;;  %575 = vmatprep.mubr.f32.mxu1 %v1106_v0  ;;  %s1030_s8 = sshll.u32 %s1244_s0, 5  ;;  %s1173_s16 = sshll.u32 %s1244_s0, 4  ;;  %vm630_vm4 = vcmask 261120  }
  0x1c   : > { %1048 = vset.pattern.permute.xlu1 %v1107_v1  ;;  %1047 = vset.pattern.permute.xlu0 %v1107_v1  ;;  %s345_s11 = scalar_lea.vmem %s1238_s3, %s1030_s8  ;;  %s1246_s30 = smov (!%p330_p9, %s329_s30), 1 }
  0x1d   : > { %v373_v2 = vld [vmem:[%s345_s11 + $0x8] sm:$0xff]  ;;  %v375_v3 = vld [vmem:[%s345_s11 + $0x18] sm:$0xff]  ;;  %s1170_s14 = scalar_lea.vmem %s1237_s2, %s1030_s8  ;;  %v372_v4 = vld [vmem:[%s345_s11] sm:$0xff]  ;;  %s1029_s15 = sshll.u32 %s1246_s30, 4 }
  0x1e   : > { %383 = vperm.xlu1 %1048, %v373_v2   ;;  %393 = vperm.xlu0 %1047, %v375_v3   ;;  %v374_v5 = vld [vmem:[%s345_s11 + $0x10] sm:$0xff]  ;;  %s334_s19 = scalar_lea.vmem %s1236_s1, %s1029_s15  ;;  %s360_s22 = scalar_lea.vmem %s1241_s6, %s1173_s16  ;;  %v366_v10 = vld [vmem:[%s1170_s14] sm:$0xff]  ;;  %v367_v15 = vld [vmem:[%s1170_s14 + $0x8] sm:$0xff] }
  0x1f   : > { %v370_v6 = vld [vmem:[%s334_s19] sm:$0xff]  ;;  %v371_v7 = vld [vmem:[%s334_s19 + $0x8] sm:$0xff]  ;;  %s355_s25 = scalar_lea.vmem %s1240_s5, %s1173_s16  ;;  %v368_v18 = vld [vmem:[%s1170_s14 + $0x10] sm:$0xff]  ;;  %s350_s28 = scalar_lea.vmem %s1239_s4, %s1173_s16 }
  0x20   : > { %v398_v8 = vcombine.high %v370_v6, %v370_v6  ;;  %v399_v9 = vcombine.high %v371_v7, %v371_v7  ;;  %v791_v11 = vld [vmem:[%s360_s22] sm:$0xff]  ;;  %v792_v12 = vld [vmem:[%s360_s22 + $0x8] sm:$0xff]  ;;  %v369_v19 = vld [vmem:[%s1170_s14 + $0x18] sm:$0xff]  ;;  %s1035_s30 = sshll.u32 %s1244_s0, 6 }
  0x21   : > { %v618_v13 = vld [vmem:[%s355_s25] sm:$0xff]  ;;  %v619_v14 = vld [vmem:[%s355_s25 + $0x8] sm:$0xff]  ;;  %vm793_vm2 = vcmp.gt.f32.partialorder %v791_v11, 0.5  ;;  %vm794_vm3 = vcmp.gt.f32.partialorder %v792_v12, 0.5  ;;  %s365_s10 = scalar_lea.vmem %s1242_s7, %s1035_s30 }
  0x22   : > { %378 = vperm.xlu1 %1048, %v372_v4   ;;  %388 = vperm.xlu0 %1047, %v374_v5   ;;  %v843_v16 = vsel %vm793_vm2, 1, %v1107_v1  ;;  %v844_v17 = vsel %vm794_vm3, 1, %v1107_v1 }
  0x23   : > { %1003 = vmatprep.subr.msk.mxu0 %vm413_vm0, %v398_v8  ;;  %1009 = vmatprep.subr.msk.mxu1 %vm413_vm0, %v399_v9 }
  0x24   : > { %1004 = vmatpush1.msk.msra.mxu0 %vm413_vm0, %v370_v6  ;;  %1010 = vmatpush1.msk.msra.mxu1 %vm413_vm0, %v371_v7  ;;  %v616_v7 = vld [vmem:[%s350_s28] sm:$0xff] }
  0x25   : > { %1005 = vmatmul.mubr.msk.f32.vlgmr.msra.gmra.mxu0 %vm400_vm1, %v366_v10  ;;  %1011 = vmatmul.mubr.msk.f32.vlgmr.msra.gmra.mxu1 %vm400_vm1, %v366_v10  ;;  %v617_v10 = vld [vmem:[%s350_s28 + $0x8] sm:$0xff] }
  0x26   : > { %492 = vmatprep.mubr.f32.mxu0 %v1106_v0  ;;  %581 = vmatprep.mubr.f32.mxu1 %v1106_v0 }
  0x27   : > { %622 = vperm.xlu0 %1047, %v618_v13   ;;  %627 = vperm.xlu1 %1048, %v619_v14  }
  0x29   : > { %1006 = vmatmul.mubr.msk.f32.gmra.mxu0 %vm400_vm1, %v367_v15  ;;  %1012 = vmatmul.mubr.msk.f32.gmra.mxu1 %vm400_vm1, %v367_v15 }
  0x2a   : > { %498 = vmatprep.mubr.f32.mxu0 %v1106_v0  ;;  %587 = vmatprep.mubr.f32.mxu1 %v1106_v0 }
  0x2b   : > { %846 = vperm.xlu0 %1047, %v843_v16   ;;  %849 = vperm.xlu1 %1048, %v844_v17  }
  0x2d   : > { %1007 = vmatmul.mubr.msk.f32.gmra.mxu0 %vm400_vm1, %v368_v18  ;;  %1013 = vmatmul.mubr.msk.f32.gmra.mxu1 %vm400_vm1, %v368_v18 }
  0x2e   : > { %504 = vmatprep.mubr.f32.mxu0 %v1106_v0  ;;  %593 = vmatprep.mubr.f32.mxu1 %v1106_v0 }
  0x31   : > { %1008 = vmatmul.mubr.msk.f32.gmra.mxu0 %vm400_vm1, %v369_v19  ;;  %1014 = vmatmul.mubr.msk.f32.gmra.mxu1 %vm400_vm1, %v369_v19 }
  0x32   : > { %701 = vmatprep.mubr.f32.mxu0 %v1106_v0  ;;  %778 = vmatprep.mubr.f32.mxu1 %v1106_v0 }
  0x99   : > { %v394_v28 = vpop.permute.xlu0 %393  ;;  %v384_v33 = vpop.permute.xlu1 %383 }
  0x9d   : > { %v389_v36 = vpop.permute.xlu0 %388  ;;  %v379_v47 = vpop.permute.xlu1 %378 }
  0xa2   : > { %v623_v11 = vpop.permute.xlu0 %622  ;;  %v628_v18 = vpop.permute.xlu1 %627 }
  0xe5   : > { %v488_v20 = vpop.f32.mrf.mxu0  ;;  %v577_v21 = vpop.f32.mrf.mxu1 }
  0xe6   : > { %v489_v60 = vadd.f32 %v488_v20, %v379_v47  ;;  %v578_v61 = vadd.f32 %v577_v21, %v379_v47 }
  0xe7   : > { %v490_v22 = vpop.f32.mrf.mxu0  ;;  %v579_v23 = vpop.f32.mrf.mxu1 }
  0xe8   : > { %v491_v56 = vadd.f32 %v490_v22, %v379_v47  ;;  %v580_v57 = vadd.f32 %v579_v23, %v379_v47  ;;  %v600_v8 = vmax.f32 %v489_v60, 0.0  ;;  %v602_v9 = vmax.f32 %v578_v61, 0.0 }
  0xe9   : > { %v494_v24 = vpop.f32.mrf.mxu0  ;;  %v583_v25 = vpop.f32.mrf.mxu1 }
  0xea   : > { %v495_v52 = vadd.f32 %v494_v24, %v384_v33  ;;  %v584_v53 = vadd.f32 %v583_v25, %v384_v33  ;;  %v601_v5 = vmax.f32 %v491_v56, 0.0  ;;  %v603_v6 = vmax.f32 %v580_v57, 0.0 }
  0xeb   : > { %v496_v26 = vpop.f32.mrf.mxu0  ;;  %v585_v27 = vpop.f32.mrf.mxu1 }
  0xec   : > { %v497_v48 = vadd.f32 %v496_v26, %v384_v33  ;;  %v586_v49 = vadd.f32 %v585_v27, %v384_v33  ;;  %v604_v3 = vmax.f32 %v495_v52, 0.0  ;;  %v606_v4 = vmax.f32 %v584_v53, 0.0  ;;  %v847_v52 = vpop.permute.xlu0 %846 }
  0xed   : > { %v500_v29 = vpop.f32.mrf.mxu0  ;;  %v589_v30 = vpop.f32.mrf.mxu1  ;;  %vm851_vm5 = vcmp.eq.s32.totalorder %v847_v52, 1 }
  0xee   : > { %v501_v45 = vadd.f32 %v500_v29, %v389_v36  ;;  %v590_v46 = vadd.f32 %v589_v30, %v389_v36  ;;  %v605_v1 = vmax.f32 %v497_v48, 0.0  ;;  %v607_v2 = vmax.f32 %v586_v49, 0.0 }
  0xef   : > { %v502_v31 = vpop.f32.mrf.mxu0  ;;  %v591_v32 = vpop.f32.mrf.mxu1 }
  0xf0   : > { %v503_v41 = vadd.f32 %v502_v31, %v389_v36  ;;  %v592_v42 = vadd.f32 %v591_v32, %v389_v36  ;;  %v608_v62 = vmax.f32 %v501_v45, 0.0  ;;  %v610_v63 = vmax.f32 %v590_v46, 0.0 }
  0xf1   : > { %v506_v34 = vpop.f32.mrf.mxu0  ;;  %v595_v35 = vpop.f32.mrf.mxu1 }
  0xf2   : > { %v507_v37 = vadd.f32 %v506_v34, %v394_v28  ;;  %v596_v38 = vadd.f32 %v595_v35, %v394_v28  ;;  %v609_v58 = vmax.f32 %v503_v41, 0.0  ;;  %v611_v59 = vmax.f32 %v592_v42, 0.0 }
  0xf3   : > { %v508_v39 = vpop.f32.mrf.mxu0  ;;  %v597_v40 = vpop.f32.mrf.mxu1 }
  0xf4   : > { %v509_v43 = vadd.f32 %v508_v39, %v394_v28  ;;  %v598_v44 = vadd.f32 %v597_v40, %v394_v28  ;;  %v612_v54 = vmax.f32 %v507_v37, 0.0  ;;  %v614_v55 = vmax.f32 %v596_v38, 0.0 }
  0xf6   : > { %v613_v50 = vmax.f32 %v509_v43, 0.0  ;;  %v615_v51 = vmax.f32 %v598_v44, 0.0 }
  0xf8   : > { %661 = vmatprep.subr.mxu0 %v613_v50  ;;  %738 = vmatprep.subr.mxu1 %v615_v51 }
  0xf9   : > { %662 = vmatpush1.msra.mxu0 %v612_v54  ;;  %739 = vmatpush1.msra.mxu1 %v614_v55  ;;  %v850_v55 = vpop.permute.xlu1 %849 }
  0xfa   : > { %663 = vmatprep.subr.mxu0 %v609_v58  ;;  %740 = vmatprep.subr.mxu1 %v611_v59  ;;  %vm852_vm6 = vcmp.eq.s32.totalorder %v850_v55, 1 }
  0xfb   : > { %664 = vmatpush1.msra.mxu0 %v608_v62  ;;  %741 = vmatpush1.msra.mxu1 %v610_v63 }
  0xfc   : > { %665 = vmatprep.subr.mxu0 %v605_v1  ;;  %742 = vmatprep.subr.mxu1 %v607_v2 }
  0xfd   : > { %666 = vmatpush1.msra.mxu0 %v604_v3  ;;  %743 = vmatpush1.msra.mxu1 %v606_v4 }
  0xfe   : > { %667 = vmatprep.subr.mxu0 %v601_v5  ;;  %744 = vmatprep.subr.mxu1 %v603_v6 }
  0xff   : > { %668 = vmatpush1.msra.mxu0 %v600_v8  ;;  %745 = vmatpush1.msra.mxu1 %v602_v9 }
 0x100   : > { %1015 = vmatmul.mubr.msk.f32.vlgmr.msra.gmra.mxu0 %vm630_vm4, %v616_v7  ;;  %1017 = vmatmul.mubr.msk.f32.vlgmr.msra.gmra.mxu1 %vm630_vm4, %v616_v7 }
 0x101   : > { %707 = vmatprep.mubr.f32.mxu0 %v1106_v0  ;;  %784 = vmatprep.mubr.f32.mxu1 %v1106_v0 }
 0x104   : > { %1016 = vmatmul.mubr.msk.f32.gmra.mxu0 %vm630_vm4, %v617_v10  ;;  %1018 = vmatmul.mubr.msk.f32.gmra.mxu1 %vm630_vm4, %v617_v10 }
 0x1c0   : > { %v703_v12 = vpop.f32.mrf.mxu0  ;;  %v780_v13 = vpop.f32.mrf.mxu1 }
 0x1c1   : > { %v1212_v14 = vadd.f32 %v703_v12, %v623_v11  ;;  %v1214_v15 = vadd.f32 %v780_v13, %v623_v11 }
 0x1c2   : > { %v705_v16 = vpop.f32.mrf.mxu0  ;;  %v782_v17 = vpop.f32.mrf.mxu1 }
 0x1c3   : > { %v1019_v19 = vmul.f32 -1.442695, %v1212_v14  ;;  %v1021_v20 = vmul.f32 -1.442695, %v1214_v15  ;;  %v706_v21 = vadd.f32 %v705_v16, %v623_v11  ;;  %v1218_v22 = vadd.f32 %v782_v17, %v623_v11 }
 0x1c4   : > { %v709_v0 = vpop.f32.mrf.mxu0  ;;  %v786_v23 = vpop.f32.mrf.mxu1 }
 0x1c5   : > { %1051 = vpow2.f32 %v1019_v19  ;;  %v1020_v24 = vmul.f32 -1.442695, %v706_v21  ;;  %v1022_v25 = vmul.f32 -1.442695, %v1218_v22  ;;  %v710_v26 = vadd.f32 %v709_v0, %v628_v18 }
 0x1c6   : > { %1053 = vpow2.f32 %v1021_v20  ;;  %v1221_v27 = vadd.f32 %v786_v23, %v628_v18  ;;  %v711_v28 = vpop.f32.mrf.mxu0  ;;  %v788_v29 = vpop.f32.mrf.mxu1 }
 0x1c7   : > { %1055 = vpow2.f32 %v1020_v24  ;;  %v1023_v30 = vmul.f32 -1.442695, %v710_v26  ;;  %v712_v31 = vadd.f32 %v711_v28, %v628_v18  ;;  %v789_v32 = vadd.f32 %v788_v29, %v628_v18 }
 0x1c8   : > { %1057 = vpow2.f32 %v1022_v25  ;;  %v1025_v33 = vmul.f32 -1.442695, %v1221_v27 }
 0x1c9   : > { %1059 = vpow2.f32 %v1023_v30  ;;  %v1024_v34 = vmul.f32 -1.442695, %v712_v31  ;;  %v1026_v35 = vmul.f32 -1.442695, %v789_v32 }
 0x1ca   : > { %1061 = vpow2.f32 %v1025_v33 }
 0x1cb   : > { %1063 = vpow2.f32 %v1024_v34 }
 0x1cc   : > { %1065 = vpow2.f32 %v1026_v35 }
 0x1d2   : > { %v1052_v36 = vpop.eup %1051 }
 0x1d3   : > { %v1054_v37 = vpop.eup %1053  ;;  %v819_v38 = vadd.f32 1.0, %v1052_v36 }
 0x1d4   : > { %v1056_v39 = vpop.eup %1055  ;;  %v821_v40 = vadd.f32 1.0, %v1054_v37 }
 0x1d5   : > { %v1058_v41 = vpop.eup %1057  ;;  %1067 = vrcp.f32 %v819_v38  ;;  %v820_v42 = vadd.f32 1.0, %v1056_v39 }
 0x1d6   : > { %v1060_v43 = vpop.eup %1059  ;;  %1069 = vrcp.f32 %v821_v40  ;;  %v822_v44 = vadd.f32 1.0, %v1058_v41 }
 0x1d7   : > { %v1062_v45 = vpop.eup %1061  ;;  %1071 = vrcp.f32 %v820_v42  ;;  %v823_v46 = vadd.f32 1.0, %v1060_v43 }
 0x1d8   : > { %v1064_v47 = vpop.eup %1063  ;;  %1073 = vrcp.f32 %v822_v44  ;;  %v825_v48 = vadd.f32 1.0, %v1062_v45 }
 0x1d9   : > { %v1066_v49 = vpop.eup %1065  ;;  %1075 = vrcp.f32 %v823_v46  ;;  %v824_v50 = vadd.f32 1.0, %v1064_v47 }
 0x1da   : > { %1077 = vrcp.f32 %v825_v48  ;;  %v826_v51 = vadd.f32 1.0, %v1066_v49 }
 0x1db   : > { %1079 = vrcp.f32 %v824_v50 }
 0x1dc   : > { %1081 = vrcp.f32 %v826_v51 }
 0x1e2   : > { %v1068_v53 = vpop.eup %1067 }
 0x1e3   : > { %v1070_v54 = vpop.eup %1069  ;;  %v853_v56 = vsel %vm851_vm5, %v1068_v53, %v1212_v14 }
 0x1e4   : > { %v1072_v57 = vpop.eup %1071  ;;  %861 = vst [vmem:[%s365_s10] sm:$0xff] %v853_v56  ;;  %v855_v58 = vsel %vm851_vm5, %v1070_v54, %v1214_v15 }
 0x1e5   : > { %v1074_v59 = vpop.eup %1073  ;;  %863 = vst [vmem:[%s365_s10 + $0x10] sm:$0xff] %v855_v58  ;;  %v854_v60 = vsel %vm851_vm5, %v1072_v57, %v706_v21 }
 0x1e6   : > { %v1076_v61 = vpop.eup %1075  ;;  %862 = vst [vmem:[%s365_s10 + $0x8] sm:$0xff] %v854_v60  ;;  %v856_v62 = vsel %vm851_vm5, %v1074_v59, %v1218_v22 }
 0x1e7   : > { %v1078_v63 = vpop.eup %1077  ;;  %864 = vst [vmem:[%s365_s10 + $0x18] sm:$0xff] %v856_v62  ;;  %v857_v1 = vsel %vm852_vm6, %v1076_v61, %v710_v26 }
 0x1e8   : > { %v1080_v2 = vpop.eup %1079  ;;  %865 = vst [vmem:[%s365_s10 + $0x20] sm:$0xff] %v857_v1  ;;  %v859_v3 = vsel %vm852_vm6, %v1078_v63, %v1221_v27 }
 0x1e9   : > { %v1082_v4 = vpop.eup %1081  ;;  %867 = vst [vmem:[%s365_s10 + $0x30] sm:$0xff] %v859_v3  ;;  %v858_v5 = vsel %vm852_vm6, %v1080_v2, %v712_v31 }
 0x1ea   : > { %866 = vst [vmem:[%s365_s10 + $0x28] sm:$0xff] %v858_v5  ;;  %v860_v6 = vsel %vm852_vm6, %v1082_v4, %v789_v32 }
 0x1eb   : > { %868 = vst [vmem:[%s365_s10 + $0x38] sm:$0xff] %v860_v6 }
 0x1ec PF: > { %s23_s29 = sadd.s32 1, %s1103_s29  }
 0x1ed   : > { %p20_p10 = scmp.ge.s32.totalorder %s23_s29, 5  }
 0x1ef   :  { %22 = sbr.rel (!%p20_p10) target bundleno = 16 (0x10), region = 89 }

</bundles_post_ra>
